<compile_context>
chip_gen: v5e
topology: v5e:2x2
jax: 0.10.0
libtpu: 0.0.40
codegen_flags: <defaults>
</compile_context>

<pallas_src>
import functools
import math

import jax
import jax.numpy as jnp
from jax.experimental import pallas as pl
from jax.experimental.pallas import tpu as pltpu


def _round_up(n, m):
    return ((n + m - 1) // m) * m


def _stacked_gru_kernel(x_ref, h_ref, wih_ref, whh_ref, bi_ref, bhn_ref,
                        o_ref, xcar_ref, *, hd, hpad):
    """One grid step == one GRU layer. x is carried across layers in VMEM scratch.

    hd   = true hidden width H (gate g occupies columns [g*hd, (g+1)*hd)).
    hpad = lane-padded hidden width (round_up(H, 128)) of h / output / carry.
    """
    layer = pl.program_id(0)

    # Load the timestep input into the carry buffer once, at the first layer.
    @pl.when(layer == 0)
    def _():
        xcar_ref[...] = x_ref[...].astype(xcar_ref.dtype)

    wdt = wih_ref.dtype                   # bf16 (or f32) weight dtype
    x = xcar_ref[...].astype(wdt)         # [Bp, Wp]
    h = h_ref[0]                          # [Bp, hpad]  (f32)

    # Gate projections on the MXU (bf16 inputs, f32 accumulation). Gates are
    # packed contiguously (r, z, n) along the lane axis at offsets 0, hd, 2*hd.
    gi = jnp.dot(x, wih_ref[0], preferred_element_type=jnp.float32) + bi_ref[0]
    gh = (jnp.dot(h.astype(wdt), whh_ref[0], preferred_element_type=jnp.float32)
          + bhn_ref[0])

    rz = jax.nn.sigmoid(gi[:, :2 * hd] + gh[:, :2 * hd])     # r,z in one slab
    r = rz[:, :hd]
    z = rz[:, hd:2 * hd]
    n = jnp.tanh(gi[:, 2 * hd:3 * hd] + r * gh[:, 2 * hd:3 * hd])

    h_new = (1.0 - z) * n + z * h[:, :hd].astype(jnp.float32)    # [Bp, hd]
    if hpad > hd:   # keep the zero-pad invariant of the hidden lanes >= H
        h_new = jnp.concatenate(
            [h_new, jnp.zeros((h_new.shape[0], hpad - hd), jnp.float32)],
            axis=-1)

    o_ref[0] = h_new.astype(o_ref.dtype)
    # Next layer's input is this layer's hidden state (stays in VMEM).
    # Carry columns >= hpad (only present if padded input dim > hpad) hit zero
    # rows of the stacked W_ih for layers >= 1, so they are harmless.
    xcar_ref[:, :hpad] = h_new.astype(xcar_ref.dtype)


def _fused_gru_stack(x_pad, h_pad, wih, whh, bi, bhn, *,
                     num_layers, bp, wp, hd, hpad, cp):
    L = num_layers
    kernel = functools.partial(_stacked_gru_kernel, hd=hd, hpad=hpad)

    w_item = jnp.dtype(wih.dtype).itemsize
    f_item = jnp.dtype(x_pad.dtype).itemsize

    cost = pl.CostEstimate(
        flops=2 * L * bp * (wp + hpad) * cp,
        transcendentals=3 * L * bp * hd,
        bytes_accessed=((wih.size + whh.size) * w_item
                        + (x_pad.size + 2 * h_pad.size) * f_item
                        + (bi.size + bhn.size) * 4),
    )

    # Scoped-VMEM budget from the actual block footprint (+ headroom):
    #   double-buffered weight/h/out/x blocks + carry scratch + gate temps.
    need = (2 * (wp * cp + hpad * cp) * w_item        # W_ih, W_hh blocks (x2)
            + 2 * 2 * bp * hpad * f_item              # h in + out blocks (x2)
            + 2 * 2 * cp * 4                          # bias blocks (x2)
            + 2 * bp * wp * f_item                    # x block
            + bp * wp * 4                             # inter-layer carry
            + 8 * bp * cp * 4)                        # gi/gh/gate temporaries
    vmem_limit = int(min(max(2 * need, 32 * 1024 * 1024), 100 * 1024 * 1024))

    return pl.pallas_call(
        kernel,
        out_shape=jax.ShapeDtypeStruct((L, bp, hpad), x_pad.dtype),
        grid_spec=pltpu.PrefetchScalarGridSpec(
            num_scalar_prefetch=0,
            grid=(L,),
            in_specs=[
                pl.BlockSpec((bp, wp), lambda l: (0, 0)),           # x_t (constant block)
                pl.BlockSpec((1, bp, hpad), lambda l: (l, 0, 0)),   # h_tm1[layer]
                pl.BlockSpec((1, wp, cp), lambda l: (l, 0, 0)),     # W_ih^T[layer] (bf16)
                pl.BlockSpec((1, hpad, cp), lambda l: (l, 0, 0)),   # W_hh^T[layer] (bf16)
                pl.BlockSpec((1, 1, cp), lambda l: (l, 0, 0)),      # folded r/z + n input bias
                pl.BlockSpec((1, 1, cp), lambda l: (l, 0, 0)),      # n-gate hidden bias
            ],
            out_specs=pl.BlockSpec((1, bp, hpad), lambda l: (l, 0, 0)),
            scratch_shapes=[pltpu.VMEM((bp, wp), jnp.float32)],     # inter-layer carry
        ),
        compiler_params=pltpu.CompilerParams(
            dimension_semantics=("arbitrary",),                     # layers are sequential
            vmem_limit_bytes=vmem_limit),
        cost_estimate=cost,
        input_output_aliases={1: 0},                                # reuse h_pad's buffer
    )(x_pad, h_pad, wih, whh, bi, bhn)


class PallasRNN:
    """Stacked GRU RNN matching the PyTorch RNN module's forward semantics."""

    def __init__(self, input_dimension, hidden_dimension, num_layers, key,
                 param_dtype=jnp.bfloat16):
        if num_layers < 1:
            raise ValueError("num_layers must be 1 or greater")
        self.input_dimension = input_dimension
        self.hidden_dimension = hidden_dimension
        self.num_layers = num_layers
        self.param_dtype = param_dtype

        D, H, L = input_dimension, hidden_dimension, num_layers
        self.Hp = _round_up(H, 128)                  # hidden lane width
        self.Cp = _round_up(3 * H, 128)              # joint (r|z|n) gate columns
        self.Wp = max(_round_up(D, 128), self.Hp)    # carry / W_ih row width
        Hp, Cp, Wp = self.Hp, self.Cp, self.Wp

        stdv = 1.0 / math.sqrt(H)
        wih = jnp.zeros((L, Wp, Cp), jnp.float32)
        whh = jnp.zeros((L, Hp, Cp), jnp.float32)
        bi = jnp.zeros((L, 1, Cp), jnp.float32)
        bhn = jnp.zeros((L, 1, Cp), jnp.float32)
        self.ref_params = []   # raw PyTorch-shaped params, for the pure-JAX reference

        for i in range(L):
            in_dim = D if i == 0 else H
            key, k1, k2, k3, k4 = jax.random.split(key, 5)
            # PyTorch GRUCell shapes: W_ih [3H, in], W_hh [3H, H], b [3H].
            w_ih = jax.random.uniform(k1, (3 * H, in_dim), jnp.float32, -stdv, stdv)
            w_hh = jax.random.uniform(k2, (3 * H, H), jnp.float32, -stdv, stdv)
            b_ih = jax.random.uniform(k3, (3 * H,), jnp.float32, -stdv, stdv)
            b_hh = jax.random.uniform(k4, (3 * H,), jnp.float32, -stdv, stdv)
            self.ref_params.append((w_ih, w_hh, b_ih, b_hh))

            # Joint gate layout: columns [0:3H) hold (r|z|n) contiguously.
            wih = wih.at[i, :in_dim, :3 * H].set(w_ih.T)
            whh = whh.at[i, :H, :3 * H].set(w_hh.T)
            b_comb = b_ih + b_hh
            bi = bi.at[i, 0, :2 * H].set(b_comb[:2 * H])       # folded r/z biases
            bi = bi.at[i, 0, 2 * H:3 * H].set(b_ih[2 * H:])    # n-gate input bias
            bhn = bhn.at[i, 0, 2 * H:3 * H].set(b_hh[2 * H:])  # n-gate hidden bias

        self.wih = wih.astype(param_dtype)      # weight-streaming dtype (bf16)
        self.whh = whh.astype(param_dtype)
        self.bi, self.bhn = bi, bhn             # biases stay f32

        wih_c, whh_c, bi_c, bhn_c = self.wih, self.whh, self.bi, self.bhn

        @jax.jit
        def _forward(x_t, h_tm1):
            B = x_t.shape[0]
            Bp = _round_up(max(B, 8), 8)   # sublane granularity
            x_pad = jnp.zeros((Bp, Wp), x_t.dtype).at[:B, :D].set(x_t)
            h_pad = jnp.zeros((L, Bp, Hp), x_t.dtype).at[:, :B, :H].set(
                h_tm1.astype(x_t.dtype))
            out = _fused_gru_stack(x_pad, h_pad, wih_c, whh_c, bi_c, bhn_c,
                                   num_layers=L, bp=Bp, wp=Wp,
                                   hd=H, hpad=Hp, cp=Cp)        # [L, Bp, Hp]
            return out[:, :B, :H]                               # slice once

        self._forward = _forward

    def __call__(self, x_t, h_tm1, context=None):
        # TODO(synk): context path (context_dimension) is unused for GRUCell
        # layers, mirroring the inspect-based dispatch in the PyTorch forward.
        hs = self._forward(x_t, h_tm1)          # [L, B, H]
        return [hs[i] for i in range(self.num_layers)]


def _gru_cell_ref(x, h, w_ih, w_hh, b_ih, b_hh, compute_dtype=jnp.float32):
    """Pure-JAX PyTorch-GRUCell reference; optionally rounds w/x/h to bf16
    (matching what the kernel feeds the MXU) while keeping math in f32."""
    H = h.shape[-1]
    xq = x.astype(compute_dtype).astype(jnp.float32)
    hq = h.astype(compute_dtype).astype(jnp.float32)
    wi = w_ih.astype(compute_dtype).astype(jnp.float32)
    wh = w_hh.astype(compute_dtype).astype(jnp.float32)
    gi = xq @ wi.T + b_ih
    gh = hq @ wh.T + b_hh
    r = jax.nn.sigmoid(gi[:, :H] + gh[:, :H])
    z = jax.nn.sigmoid(gi[:, H:2 * H] + gh[:, H:2 * H])
    n = jnp.tanh(gi[:, 2 * H:] + r * gh[:, 2 * H:])
    return (1.0 - z) * n + z * h.astype(jnp.float32)


if __name__ == "__main__":
    key = jax.random.PRNGKey(0)
    batch = 2
    input_dim = 16
    hidden_dim = 32
    num_layers = 3

    k_model, k_x, k_h = jax.random.split(key, 3)
    x_t = jax.random.normal(k_x, (batch, input_dim), jnp.float32)
    h_tm1 = jax.random.normal(k_h, (num_layers, batch, hidden_dim), jnp.float32)

    # Default bandwidth-optimized model (bf16 weights).
    rnn_bf16 = PallasRNN(input_dim, hidden_dim, num_layers, k_model,
                         param_dtype=jnp.bfloat16)
    h_bf16 = rnn_bf16(x_t, h_tm1)
    h_bf16 = [jax.block_until_ready(h) for h in h_bf16]

    # f32-weight model: exact check of the padded joint-gate layout math.
    rnn_f32 = PallasRNN(input_dim, hidden_dim, num_layers, k_model,
                        param_dtype=jnp.float32)
    h_f32 = rnn_f32(x_t, h_tm1)
    h_f32 = [jax.block_until_ready(h) for h in h_f32]

    # Cross-check against plain-JAX references (unpadded math).
    x_ref32 = x_t
    x_ref16 = x_t
    for i in range(num_layers):
        w_ih, w_hh, b_ih, b_hh = rnn_f32.ref_params[i]
        ref32 = _gru_cell_ref(x_ref32, h_tm1[i], w_ih, w_hh, b_ih, b_hh,
                              compute_dtype=jnp.float32)
        ref16 = _gru_cell_ref(x_ref16, h_tm1[i], w_ih, w_hh, b_ih, b_hh,
                              compute_dtype=jnp.bfloat16)
        assert h_f32[i].shape == (batch, hidden_dim)
        assert h_bf16[i].shape == (batch, hidden_dim)
        assert jnp.allclose(h_f32[i], ref32, atol=1e-5, rtol=1e-5), \
            f"f32 layer {i} mismatch"
        assert jnp.allclose(h_bf16[i], ref16, atol=2e-2, rtol=2e-2), \
            f"bf16 layer {i} mismatch"
        x_ref32, x_ref16 = ref32, ref16

    print("KERNEL_OK")
</pallas_src>

<mosaic_0001>
module attributes {stable_mosaic.version = 11 : i64} {
  func.func @_stacked_gru_kernel(%arg0: i32, %arg1: memref<8x128xf32, #tpu.memory_space<vmem>>, %arg2: memref<1x8x128xf32, #tpu.memory_space<vmem>>, %arg3: memref<1x128x128xbf16, #tpu.memory_space<vmem>>, %arg4: memref<1x128x128xbf16, #tpu.memory_space<vmem>>, %arg5: memref<1x1x128xf32, #tpu.memory_space<vmem>>, %arg6: memref<1x1x128xf32, #tpu.memory_space<vmem>>, %arg7: memref<1x8x128xf32, #tpu.memory_space<vmem>>, %arg8: memref<8x128xf32, #tpu.memory_space<vmem>>) attributes {dimension_semantics = [#tpu.dimension_semantics<arbitrary>], iteration_bounds = array<i64: 3>, scalar_prefetch = 0 : i64, scratch_operands = 1 : i64, tpu.core_type = #tpu.core_type<tc>, window_params = [{pipeline_mode = #tpu.pipeline_mode<synchronous>, transform_indices = @transform_0, window_bounds = array<i64: 8, 128>}, {transform_indices = @transform_1, window_bounds = array<i64: 1, 8, 128>}, {transform_indices = @transform_2, window_bounds = array<i64: 1, 128, 128>}, {transform_indices = @transform_3, window_bounds = array<i64: 1, 128, 128>}, {transform_indices = @transform_4, window_bounds = array<i64: 1, 1, 128>}, {transform_indices = @transform_5, window_bounds = array<i64: 1, 1, 128>}, {transform_indices = @transform_6, window_bounds = array<i64: 1, 8, 128>}]} {
    %c0_i32 = arith.constant 0 : i32
    %0 = arith.cmpi eq, %arg0, %c0_i32 : i32
    %1 = arith.extui %0 : i1 to i32
    %c0_i32_0 = arith.constant 0 : i32
    %2 = arith.cmpi ne, %1, %c0_i32_0 : i32
    scf.if %2 {
      %c0_26 = arith.constant 0 : index
      %c0_27 = arith.constant 0 : index
      %49 = vector.load %arg1[%c0_26, %c0_27] : memref<8x128xf32, #tpu.memory_space<vmem>>, vector<8x128xf32>
      %c0_28 = arith.constant 0 : index
      %c0_29 = arith.constant 0 : index
      %50 = vector.load %arg8[%c0_28, %c0_29] : memref<8x128xf32, #tpu.memory_space<vmem>>, vector<8x128xf32>
      tpu.vector_store %arg8[%c0_28, %c0_29], %49 {strides = array<i32>} : memref<8x128xf32, #tpu.memory_space<vmem>>, vector<8x128xf32>,
    } else {
    }
    %c0 = arith.constant 0 : index
    %c0_1 = arith.constant 0 : index
    %3 = vector.load %arg8[%c0, %c0_1] : memref<8x128xf32, #tpu.memory_space<vmem>>, vector<8x128xf32>
    %4 = arith.truncf %3 : vector<8x128xf32> to vector<8x128xbf16>
    %c0_2 = arith.constant 0 : index
    %c0_3 = arith.constant 0 : index
    %c0_4 = arith.constant 0 : index
    %5 = vector.load %arg2[%c0_2, %c0_3, %c0_4] : memref<1x8x128xf32, #tpu.memory_space<vmem>>, vector<1x8x128xf32>
    %6 = vector.shape_cast %5 : vector<1x8x128xf32> to vector<8x128xf32>
    %c0_5 = arith.constant 0 : index
    %c0_6 = arith.constant 0 : index
    %c0_7 = arith.constant 0 : index
    %7 = vector.load %arg3[%c0_5, %c0_6, %c0_7] : memref<1x128x128xbf16, #tpu.memory_space<vmem>>, vector<1x128x128xbf16>
    %8 = vector.shape_cast %7 : vector<1x128x128xbf16> to vector<128x128xbf16>
    %cst = arith.constant dense<0.000000e+00> : vector<8x128xf32>
    %9 = tpu.matmul %4, %8, %cst {dimension_numbers = #tpu.dot_dimension_numbers<[1], [0], [0], [1], [0, 0, 1, 1], [], []>} : vector<8x128xbf16>, vector<128x128xbf16>, vector<8x128xf32> -> vector<8x128xf32>
    %c0_8 = arith.constant 0 : index
    %c0_9 = arith.constant 0 : index
    %c0_10 = arith.constant 0 : index
    %10 = vector.load %arg5[%c0_8, %c0_9, %c0_10] : memref<1x1x128xf32, #tpu.memory_space<vmem>>, vector<1x1x128xf32>
    %11 = vector.shape_cast %10 : vector<1x1x128xf32> to vector<1x128xf32>
    %12 = vector.broadcast %11 : vector<1x128xf32> to vector<8x128xf32>
    %13 = arith.addf %9, %12 : vector<8x128xf32>
    %14 = arith.truncf %6 : vector<8x128xf32> to vector<8x128xbf16>
    %c0_11 = arith.constant 0 : index
    %c0_12 = arith.constant 0 : index
    %c0_13 = arith.constant 0 : index
    %15 = vector.load %arg4[%c0_11, %c0_12, %c0_13] : memref<1x128x128xbf16, #tpu.memory_space<vmem>>, vector<1x128x128xbf16>
    %16 = vector.shape_cast %15 : vector<1x128x128xbf16> to vector<128x128xbf16>
    %cst_14 = arith.constant dense<0.000000e+00> : vector<8x128xf32>
    %17 = tpu.matmul %14, %16, %cst_14 {dimension_numbers = #tpu.dot_dimension_numbers<[1], [0], [0], [1], [0, 0, 1, 1], [], []>} : vector<8x128xbf16>, vector<128x128xbf16>, vector<8x128xf32> -> vector<8x128xf32>
    %c0_15 = arith.constant 0 : index
    %c0_16 = arith.constant 0 : index
    %c0_17 = arith.constant 0 : index
    %18 = vector.load %arg6[%c0_15, %c0_16, %c0_17] : memref<1x1x128xf32, #tpu.memory_space<vmem>>, vector<1x1x128xf32>
    %19 = vector.shape_cast %18 : vector<1x1x128xf32> to vector<1x128xf32>
    %20 = vector.broadcast %19 : vector<1x128xf32> to vector<8x128xf32>
    %21 = arith.addf %17, %20 : vector<8x128xf32>
    %22 = vector.extract_strided_slice %13 {offsets = [0, 0], sizes = [8, 64], strides = [1, 1]} : vector<8x128xf32> to vector<8x64xf32>
    %23 = vector.extract_strided_slice %21 {offsets = [0, 0], sizes = [8, 64], strides = [1, 1]} : vector<8x128xf32> to vector<8x64xf32>
    %24 = arith.addf %22, %23 : vector<8x64xf32>
    %25 = arith.negf %24 : vector<8x64xf32>
    %26 = math.exp %25 : vector<8x64xf32>
    %cst_18 = arith.constant 1.000000e+00 : f32
    %27 = vector.broadcast %cst_18 : f32 to vector<8x64xf32>
    %28 = arith.addf %27, %26 : vector<8x64xf32>
    %29 = arith.divf %27, %28 : vector<8x64xf32>
    %30 = vector.extract_strided_slice %29 {offsets = [0, 0], sizes = [8, 32], strides = [1, 1]} : vector<8x64xf32> to vector<8x32xf32>
    %31 = vector.extract_strided_slice %29 {offsets = [0, 32], sizes = [8, 32], strides = [1, 1]} : vector<8x64xf32> to vector<8x32xf32>
    %32 = vector.extract_strided_slice %13 {offsets = [0, 64], sizes = [8, 32], strides = [1, 1]} : vector<8x128xf32> to vector<8x32xf32>
    %33 = vector.extract_strided_slice %21 {offsets = [0, 64], sizes = [8, 32], strides = [1, 1]} : vector<8x128xf32> to vector<8x32xf32>
    %34 = arith.mulf %30, %33 : vector<8x32xf32>
    %35 = arith.addf %32, %34 : vector<8x32xf32>
    %36 = math.tanh %35 : vector<8x32xf32>
    %cst_19 = arith.constant 1.000000e+00 : f32
    %37 = vector.broadcast %cst_19 : f32 to vector<8x32xf32>
    %38 = arith.subf %37, %31 : vector<8x32xf32>
    %39 = arith.mulf %38, %36 : vector<8x32xf32>
    %40 = vector.extract_strided_slice %6 {offsets = [0, 0], sizes = [8, 32], strides = [1, 1]} : vector<8x128xf32> to vector<8x32xf32>
    %41 = arith.mulf %31, %40 : vector<8x32xf32>
    %42 = arith.addf %39, %41 : vector<8x32xf32>
    %cst_20 = arith.constant 0.000000e+00 : f32
    %43 = vector.broadcast %cst_20 : f32 to vector<8x96xf32>
    %44 = tpu.concatenate %42, %43 in 1 : vector<8x32xf32>, vector<8x96xf32> -> vector<8x128xf32>
    %c0_21 = arith.constant 0 : index
    %c0_22 = arith.constant 0 : index
    %c0_23 = arith.constant 0 : index
    %45 = vector.load %arg7[%c0_21, %c0_22, %c0_23] : memref<1x8x128xf32, #tpu.memory_space<vmem>>, vector<1x8x128xf32>
    %46 = vector.shape_cast %45 : vector<1x8x128xf32> to vector<8x128xf32>
    %47 = vector.shape_cast %44 : vector<8x128xf32> to vector<1x8x128xf32>
    tpu.vector_store %arg7[%c0_21, %c0_22, %c0_23], %47 {strides = array<i32>} : memref<1x8x128xf32, #tpu.memory_space<vmem>>, vector<1x8x128xf32>,
    %c0_24 = arith.constant 0 : index
    %c0_25 = arith.constant 0 : index
    %48 = vector.load %arg8[%c0_24, %c0_25] : memref<8x128xf32, #tpu.memory_space<vmem>>, vector<8x128xf32>
    tpu.vector_store %arg8[%c0_24, %c0_25], %44 {strides = array<i32>} : memref<8x128xf32, #tpu.memory_space<vmem>>, vector<8x128xf32>,
    return
  }
  func.func @transform_0(%arg0: i32) -> (i32, i32) {
    %c0_i32 = arith.constant 0 : i32
    %c0_i32_0 = arith.constant 0 : i32
    %c0_i32_1 = arith.constant 0 : i32
    return %c0_i32, %c0_i32_0 : i32, i32
  }
  func.func @transform_1(%arg0: i32) -> (i32, i32, i32) {
    %c0_i32 = arith.constant 0 : i32
    %c0_i32_0 = arith.constant 0 : i32
    %c0_i32_1 = arith.constant 0 : i32
    return %arg0, %c0_i32, %c0_i32_0 : i32, i32, i32
  }
  func.func @transform_2(%arg0: i32) -> (i32, i32, i32) {
    %c0_i32 = arith.constant 0 : i32
    %c0_i32_0 = arith.constant 0 : i32
    %c0_i32_1 = arith.constant 0 : i32
    return %arg0, %c0_i32, %c0_i32_0 : i32, i32, i32
  }
  func.func @transform_3(%arg0: i32) -> (i32, i32, i32) {
    %c0_i32 = arith.constant 0 : i32
    %c0_i32_0 = arith.constant 0 : i32
    %c0_i32_1 = arith.constant 0 : i32
    return %arg0, %c0_i32, %c0_i32_0 : i32, i32, i32
  }
  func.func @transform_4(%arg0: i32) -> (i32, i32, i32) {
    %c0_i32 = arith.constant 0 : i32
    %c0_i32_0 = arith.constant 0 : i32
    %c0_i32_1 = arith.constant 0 : i32
    return %arg0, %c0_i32, %c0_i32_0 : i32, i32, i32
  }
  func.func @transform_5(%arg0: i32) -> (i32, i32, i32) {
    %c0_i32 = arith.constant 0 : i32
    %c0_i32_0 = arith.constant 0 : i32
    %c0_i32_1 = arith.constant 0 : i32
    return %arg0, %c0_i32, %c0_i32_0 : i32, i32, i32
  }
  func.func @transform_6(%arg0: i32) -> (i32, i32, i32) {
    %c0_i32 = arith.constant 0 : i32
    %c0_i32_0 = arith.constant 0 : i32
    %c0_i32_1 = arith.constant 0 : i32
    return %arg0, %c0_i32, %c0_i32_0 : i32, i32, i32
  }
}

</mosaic_0001>

<bundles_post_ra>
// kernel: _forward.1
= control target key start
LH: loop header
LB: loop body
LE: loop exit
PB: predicated region body
PF: predicated region fallthrough
CT: control target
= control target key end

     0   :  { %s1183_s0 = inlined_call_operand.vmem [shape: f32[8,128], index: 0, kind: input, shape index: {}]   ;;  %s1184_s1 = inlined_call_operand.vmem [shape: f32[3,8,128], index: 1, kind: input, shape index: {}, may-alias: {1,6}]   ;;  %s1185_s2 = inlined_call_operand.hbm [shape: bf16[3,128,128], index: 2, kind: input, shape index: {}]   ;;  %s1186_s3 = inlined_call_operand.hbm [shape: bf16[3,128,128], index: 3, kind: input, shape index: {}]   ;;  %s1187_s4 = inlined_call_operand.vmem [shape: f32[3,1,128], index: 4, kind: input, shape index: {}]   ;;  %s1188_s5 = inlined_call_operand.vmem [shape: f32[3,1,128], index: 5, kind: input, shape index: {}]   ;;  %s1189_s6 = inlined_call_operand.vmem [shape: f32[3,8,128], index: 6, kind: output, shape index: {}, may-alias: {1,6}]  }
   0x1   :  { %1190 = sst [smem:[#allocation9_spill]] %s1185_s2 }
   0x2   :  { %11 = vsyncpa [#allocation4], 0 }
   0x3   :  { %13 = vsyncpa [#allocation4 + $0x1], 0 }
   0x4   :  { %14 = vsyncpa [#allocation6], 0 }
   0x5   :  { %16 = vsyncpa [#allocation6 + $0x1], 0  ;;  %s997_s21 = smov 0   ;;  %s999_s22 = smov 0  }
   0x6   :  { %s1001_s23 = smov 0   ;;  %s1003_s24 = smov 0  }
   0x7 LB: > { %s1016_s25 = sadd.s32 4294967295, %s955_s24   ;;  %s1019_s26 = sadd.s32 1, %s955_s24   ;;  %s955_s24 = sphi %s1003_s24, %s1199_s24   ;;  %s951_s23 = sphi %s1001_s23, %s1198_s23   ;;  %s947_s22 = sphi %s999_s22, %s1197_s22   ;;  %s943_s21 = sphi %s997_s21, %s1196_s21  }
   0x8   : > { %s73_s27 = ssub.s32 %s955_s24, %s1019_s26  ;;  %s76_s28 = sadd.s32 1, %s951_s23 }
   0x9   : > { %p74_p0 = scmp.eq.s32.totalorder %s73_s27, 0  ;;  %p83_p1 = scmp.ne.s32.totalorder %s951_s23, %s947_s22 }
   0xa   : > { %p84_p2 = scmp.eq.s32.totalorder %s955_s24, 0  ;;  %p89_p3 = scmp.ne.s32.totalorder %s947_s22, %s943_s21 }
   0xb   : > { %s1029_s29 = scalar_select %p74_p0, %s951_s23, %s76_s28  }
   0xc   : > { %p1031_p4 = por %p84_p2, %p83_p1  ;;  %p90_p5 = scmp.eq.s32.totalorder %s1016_s25, 0 }
   0xd   : > { %p811_p6 = scmp.lt.s32.totalorder %s955_s24, 3  ;;  %s1042_s8 = sand.u32 1, %s951_s23  }
   0xe   : > { %p1037_p7 = por %p90_p5, %p89_p3  ;;  %s703_s9 = sshll.u32 %s1042_s8, 6 }
   0xf   : > { %s782_s10 = sshll.u32 %s955_s24, 6  ;;  %s1193_s2 = sld [smem:[#allocation9_spill]] }
  0x10   : > { %s231_s14 = scalar_lea.vmem [#allocation3], %s703_s9  ;;  %p1055_p8 = pnand %p811_p6, %p1031_p4 }
  0x11   : > { %s239_s15 = sshll.u32 %s231_s14, 4  ;;  %p709_p9 = scmp.ge.s32.totalorder %s955_s24, 1  ;;  %s240_s15 = int_to_ptr.vmem [resolvable:$true] %s239_s15 }
  0x12   : > { %s228_s18 = scalar_lea.sflag [#allocation4], %s1042_s8  ;;  %p861_p11 = pneg %p1055_p8 }
  0x15   : > { %s236_s13 = scalar_lea.hbm %s1193_s2, %s782_s10  ;;  %s864_s28 = scalar_lea.hbm %s1193_s2, 192 }
  0x16   : > { %s237_s16 = sshll.u32 %s236_s13, 4  ;;  %s238_s16 = int_to_ptr.hbm [resolvable:$true] %s237_s16 }
  0x17   : > { %s857_s19 = sshra.s32 %s238_s16, 4  ;;  %s858_s19 = int_to_ptr.hbm [resolvable:$true] %s857_s19 }
  0x18   : > { %s859_s20 = scalar_lea.hbm %s858_s19, 64  ;;  %p865_p0 = scmp.lt.s32.totalorder %s858_s19, %s1193_s2 }
  0x19   : > { %p860_p10 = scmp.ne.s32.totalorder %s858_s19, %s859_s20  ;;  %p866_p1 = scmp.lt.s32.totalorder %s864_s28, %s859_s20 }
  0x1b   : > { %p862_p12 = pnand %p861_p11, %p860_p10  ;;  %p867_p2 = por %p866_p1, %p865_p0 }
  0x1d   : > { %p863_p13 = pneg %p862_p12 }
  0x1f   : > { %p868_p3 = pnand %p867_p2, %p863_p13 }
  0x21   : > { %871 = shalt.err (!%p868_p3)
}
  0x22   : > { %s957_s12 = smov 64   ;;  %s958_s13 = smov 4  }
  0x23   : > { %807 = dma.hbm_to_vmem [thread:$0]  (!%p1055_p8), %s238_s16, 1024, %s240_s15, %s228_s18, %s957_s12, %s957_s12, %s958_s13  }
  0x24   : > { %p281_p4 = scmp.lt.s32.totalorder %s955_s24, 4  ;;  %s258_s19 = scalar_lea.hbm %s1186_s3, %s782_s10 }
  0x25   : > { %s259_s27 = sshll.u32 %s258_s19, 4  ;;  %s253_s28 = scalar_lea.vmem [#allocation5], %s703_s9  ;;  %s260_s27 = int_to_ptr.hbm [resolvable:$true] %s259_s27 }
  0x26   : > { %p1082_p5 = pnand %p709_p9, %p281_p4  ;;  %s261_s30 = sshll.u32 %s253_s28, 4  ;;  %s262_s30 = int_to_ptr.vmem [resolvable:$true] %s261_s30 }
  0x27   : > { %s250_s11 = scalar_lea.sflag [#allocation6], %s1042_s8  ;;  %s887_s2 = sshra.s32 %s260_s27, 4  ;;  %s888_s2 = int_to_ptr.hbm [resolvable:$true] %s887_s2 }
  0x28   : > { %s889_s15 = scalar_lea.hbm %s888_s2, 64  ;;  %s894_s16 = scalar_lea.hbm %s1186_s3, 192 }
  0x29   : > { %p890_p6 = scmp.ne.s32.totalorder %s888_s2, %s889_s15  ;;  %p895_p9 = scmp.lt.s32.totalorder %s888_s2, %s1186_s3 }
  0x2a   : > { %p896_p13 = scmp.lt.s32.totalorder %s894_s16, %s889_s15 }
  0x2b   : > { %p892_p10 = pnand %p890_p6, %p861_p11 }
  0x2c   : > { %p897_p0 = por %p896_p13, %p895_p9 }
  0x2d   : > { %p893_p12 = pneg %p892_p10 }
  0x2f   : > { %p898_p1 = pnand %p897_p0, %p893_p12 }
  0x31   : > { %901 = shalt.err (!%p898_p1)
}
  0x32   : > { %810 = dma.hbm_to_vmem [thread:$0]  (!%p1055_p8), %s260_s27, 1024, %s262_s30, %s250_s11, %s957_s12, %s957_s12, %s958_s13  }
  0x33   : > { %285 = sbr.rel (%p1082_p5) target bundleno = 692 (0x2b4), region = 44  ;;  %s287_s8 = sand.u32 (!%p1082_p5), 1, %s947_s22  }
  0x34   : > { %s710_s9 = sshll.u32 (!%p1082_p5), %s287_s8, 6  ;;  %s288_s21 = scalar_lea.sflag (!%p1082_p5), [#allocation4], %s287_s8 }
  0x35   : > { %s1103_s19 = scalar_lea.vmem (!%p1082_p5), [#allocation3], %s710_s9 }
  0x38   : > { %934 = dma.done.wait (%p1037_p7), %s288_s21, 1024  }
  0x39   : > { %936 = vsyncadd (%p1037_p7), %s288_s21, 4294966272  ;;  %s298_s2 = scalar_lea.sflag [#allocation6], %s287_s8  ;;  %s1109_s28 = scalar_lea.vmem [#allocation5], %s710_s9 }
  0x3a   : > { %938 = dma.done.wait (%p1037_p7), %s298_s2, 1024  }
  0x3b   : > { %940 = vsyncadd (%p1037_p7), %s298_s2, 4294966272  ;;  %p345_p8 = scmp.lt.s32.totalorder %s1016_s25, 2  ;;  %p714_p7 = scmp.ne.s32.totalorder %s1016_s25, 0 }
  0x3d   : > { %s1117_s17 = scalar_select %p345_p8, %s1016_s25, 2 }
  0x3e   : > { %362 = sbr.rel (%p714_p7) target bundleno = 69 (0x45), region = 56 }
  0x3f   : > { %s712_s12 = sshll.u32 %s1117_s17, 3  ;;  %s351_s27 = scalar_lea.vmem %s1187_s4, %s1117_s17 }
  0x40   : > { %s1127_s15 = scalar_lea.vmem %s1184_s1, %s712_s12  ;;  %s354_s10 = scalar_lea.vmem %s1188_s5, %s1117_s17 }
  0x41   : > { %s1136_s14 = scalar_lea.vmem %s1189_s6, %s712_s12 }
  0x43   : > { %v363_v0 = vld [vmem:[%s1183_s0] sm:$0xff] }
  0x44   : > { %364 = vst [vmem:[#allocation2] sm:$0xff] %v363_v0 }
  0x45 PF: > { %v791_v1 = vld [vmem:[%s1103_s19 + $0x38] sm:$0xff]  ;;  %v790_v3 = vld [vmem:[%s1103_s19 + $0x30] sm:$0xff]  ;;  %v789_v5 = vld [vmem:[%s1103_s19 + $0x28] sm:$0xff]  ;;  %s960_s17 = smov 96   ;;  %s961_s12 = smov 32   ;;  %vm578_vm4 = vcmask 261120  }
  0x46   : > { %v799_v2 = vld [vmem:[%s1109_s28 + $0x38] sm:$0xff]  ;;  %436 = vmatpush.bf16.msra.mxu0 %v791_v1  ;;  %v798_v4 = vld [vmem:[%s1109_s28 + $0x30] sm:$0xff]  ;;  %v797_v6 = vld [vmem:[%s1109_s28 + $0x28] sm:$0xff] }
  0x47   : > { %518 = vmatpush.bf16.msra.mxu1 %v799_v2  ;;  %v788_v7 = vld [vmem:[%s1103_s19 + $0x20] sm:$0xff]  ;;  %v787_v9 = vld [vmem:[%s1103_s19 + $0x18] sm:$0xff]  ;;  %v786_v11 = vld [vmem:[%s1103_s19 + $0x10] sm:$0xff] }
  0x48   : > { %v796_v8 = vld [vmem:[%s1109_s28 + $0x20] sm:$0xff]  ;;  %v795_v10 = vld [vmem:[%s1109_s28 + $0x18] sm:$0xff]  ;;  %v794_v12 = vld [vmem:[%s1109_s28 + $0x10] sm:$0xff] }
  0x49   : > { %v785_v13 = vld [vmem:[%s1103_s19 + $0x8] sm:$0xff]  ;;  %v784_v15 = vld [vmem:[%s1103_s19] sm:$0xff]  ;;  %v367_v18 = vld [vmem:[%s1127_s15] sm:$0xff]  ;;  %s959_s19 = smov 64  }
  0x4a   : > { %437 = vmatpush.bf16.msra.mxu0 %v790_v3  ;;  %v793_v14 = vld [vmem:[%s1109_s28 + $0x8] sm:$0xff]  ;;  %v792_v16 = vld [vmem:[%s1109_s28] sm:$0xff]  ;;  %v449_v20 = vpack.c.bf16 %v367_v18, %v367_v18  ;;  %v850_v21 = vld [vmem:[%s354_s10] ss:$0 sm:$0xff] }
  0x4b   : > { %519 = vmatpush.bf16.msra.mxu1 %v798_v4  ;;  %v365_v17 = vld [vmem:[#allocation2] sm:$0xff] }
  0x4c   : > { %v366_v19 = vpack.c.bf16 %v365_v17, %v365_v17  ;;  %v849_v27 = vld [vmem:[%s351_s27] ss:$0 sm:$0xff] }
  0x4e   : > { %438 = vmatpush.bf16.msra.mxu0 %v789_v5 }
  0x4f   : > { %520 = vmatpush.bf16.msra.mxu1 %v797_v6 }
  0x52   : > { %439 = vmatpush.bf16.msra.mxu0 %v788_v7 }
  0x53   : > { %521 = vmatpush.bf16.msra.mxu1 %v796_v8 }
  0x56   : > { %440 = vmatpush.bf16.msra.mxu0 %v787_v9 }
  0x57   : > { %522 = vmatpush.bf16.msra.mxu1 %v795_v10 }
  0x5a   : > { %441 = vmatpush.bf16.msra.mxu0 %v786_v11 }
  0x5b   : > { %523 = vmatpush.bf16.msra.mxu1 %v794_v12 }
  0x5e   : > { %442 = vmatpush.bf16.msra.mxu0 %v785_v13 }
  0x5f   : > { %524 = vmatpush.bf16.msra.mxu1 %v793_v14 }
  0x62   : > { %443 = vmatpush.bf16.msra.mxu0 %v784_v15 }
  0x63   : > { %525 = vmatpush.bf16.msra.mxu1 %v792_v16 }
  0x65   : > { %444 = vmatmul.bf16.vlgmr.msra.gmra.mxu0 %v366_v19 }
  0x66   : > { %526 = vmatmul.bf16.vlgmr.msra.gmra.mxu1 %v449_v20 }
  0xe2   : > { %v445_v22 = vpop.f32.mrf.mxu0 }
  0xe3   : > { %v527_v23 = vpop.f32.mrf.mxu1  ;;  %v446_v28 = vadd.f32 %v849_v27, %v445_v22 }
  0xe4   : > { %v528_v24 = vadd.f32 %v850_v21, %v527_v23 }
  0xe6   : > { %552 = vrot.lane.b32.xlu0 %v528_v24, %s959_s19  ;;  %v531_v29 = vadd.f32 %v528_v24, %v446_v28 }
  0xe8   : > { %v779_v30 = vmul.f32 -1.442695, %v531_v29 }
  0xea   : > { %v447_v26 = vpop.f32.mrf.mxu0  ;;  %851 = vpow2.f32 %v779_v30 }
  0xeb   : > { %v529_v25 = vpop.f32.mrf.mxu1 }
  0xf0   : > { %v852_v31 = vpop.eup %851 }
  0xf1   : > { %v535_v32 = vadd.f32 1.0, %v852_v31 }
  0xf3   : > { %853 = vrcp.f32 %v535_v32  ;;  %v547_v38 = vand.u32 2147483648, %v535_v32  ;;  %vm541_vm1 = vweird.f32 %v535_v32  ;;  %v545_v39 = vand.u32 2147483647, %v535_v32 }
  0xf5   : > { %v548_v41 = vor.u32 1.1754944e-38, %v547_v38  ;;  %vm546_vm3 = vcmp.eq.f32.partialorder %v545_v39, 8.507059e+37 }
  0xf9   : > { %v854_v33 = vpop.eup %853 }
  0xfa   : > { %v537_v34 = vmul.f32 %v854_v33, %v535_v32  ;;  %vm542_vm0 = vweird.f32 %v854_v33 }
  0xfb   : > { %vm543_vm2 = vmor %vm541_vm1, %vm542_vm0 }
  0xfc   : > { %v538_v35 = vsub.f32 1.0, %v537_v34 }
  0xfe   : > { %v539_v36 = vmul.f32 %v854_v33, %v538_v35 }
 0x100   : > { %v540_v37 = vadd.f32 %v854_v33, %v539_v36 }
 0x102   : > { %v544_v40 = vsel %vm543_vm2, %v854_v33, %v540_v37 }
 0x103   : > { %v549_v43 = vsel %vm546_vm3, %v548_v41, %v544_v40 }
 0x104   : > { %v562_v49 = vsub.f32 1.0, %v549_v43 }
 0x158   : > { %v553_v42 = vpop.permute.xlu0 %552 }
 0x159   : > { %v555_v44 = vmul.f32 %v553_v42, %v549_v43 }
 0x15b   : > { %557 = vrot.lane.b32.xlu0 %v555_v44, %s959_s19 }
 0x1cd   : > { %v558_v45 = vpop.permute.xlu0 %557 }
 0x1ce   : > { %v560_v46 = vadd.f32 %v558_v45, %v446_v28 }
 0x1d0   : > { %855 = vtanh.f32 %v560_v46 }
 0x1d6   : > { %v856_v47 = vpop.eup %855 }
 0x1d7   : > { %564 = vrot.lane.b32.xlu1 %v856_v47, %s960_s17 }
 0x1df   : > { %569 = vrot.lane.b32.xlu1 %v367_v18, %s961_s12 }
 0x249   : > { %v565_v48 = vpop.permute.xlu1 %564 }
 0x24a   : > { %v567_v51 = vmul.f32 %v565_v48, %v562_v49 }
 0x251   : > { %v570_v50 = vpop.permute.xlu1 %569 }
 0x252   : > { %v572_v52 = vmul.f32 %v570_v50, %v549_v43 }
 0x254   : > { %v573_v53 = vadd.f32 %v572_v52, %v567_v51 }
 0x256   : > { %575 = vrot.lane.b32.xlu2 %v573_v53, %s960_s17 }
 0x2b0   : > { %v576_v54 = vpop.permute.xlu2 %575 }
 0x2b1   : > { %v579_v55 = vsel %vm578_vm4, %v576_v54, 0.0 }
 0x2b2   : > { %580 = vst [vmem:[%s1136_s14] sm:$0xff] %v579_v55 }
 0x2b3   : > { %581 = vst [vmem:[#allocation2] sm:$0xff] %v579_v55 }
 0x2b4 PF: > { %p19_p11 = scmp.ge.s32.totalorder %s1019_s26, 5   ;;  %s1196_s21 = smov %s947_s22 }
 0x2b5   : > { %s1197_s22 = smov %s951_s23  ;;  %s1198_s23 = smov %s1029_s29 }
 0x2b6   : > { %s1199_s24 = smov %s1019_s26  ;;  %21 = sbr.rel (!%p19_p11) target bundleno = 7 (0x7), region = 110 }
 0x2bb   :  { %601 = vsyncpa [#allocation4], 1 }
 0x2bc   :  { %603 = vsyncpa [#allocation4 + $0x1], 1 }
 0x2bd   :  { %604 = vsyncpa [#allocation6], 1 }
 0x2be   :  { %606 = vsyncpa [#allocation6 + $0x1], 1 }

</bundles_post_ra>
